<compile_context>
chip_gen: v7x
topology: tpu7x:2x2x1
jax: 0.10.0
libtpu: 0.0.40
codegen_flags: <defaults>
</compile_context>

<pallas_src>
import math

import jax
import jax.numpy as jnp
from jax.experimental import pallas as pl
from jax.experimental.pallas import tpu as pltpu


_VMEM_LIMIT = 32 * 1024 * 1024   # explicit scoped-VMEM limit, safe on v5e/v6e/v7x


# ----------------------------------------------------------------------------
# small in-kernel helpers
# ----------------------------------------------------------------------------

def _prelu(y, alpha):
    # alpha: (1, 1) value -> broadcasts over (..., C)
    return jnp.where(y >= 0.0, y, alpha * y)


def _pointwise(x, w, shift):
    # x: (..., cin), w: (cin, cout) value (BN scale folded), shift: (1, cout).
    # Unrolled over cin on the VPU (MXU useless at these channel counts).
    cin = x.shape[-1]
    cout = w.shape[-1]
    acc = jnp.zeros(x.shape[:-1] + (cout,), jnp.float32)
    for c in range(cin):
        acc = acc + x[..., c:c + 1] * w[c:c + 1, :]
    return acc + shift


# ----------------------------------------------------------------------------
# fused main-path kernel: 1x1 conv+BN+PReLU -> dw x dw depthwise+BN+PReLU ->
# concat -> (optional) sigmoid-gate multiply
# ----------------------------------------------------------------------------

def _make_main_kernel(*, cin, c1, oup, th, ww, dw, use_prelu, apply_gate):
    ph = dw // 2

    def kernel(*refs):
        if apply_gate:
            (x_ref, xh_ref, g_ref, wp_ref, bp_ref, wc_ref, bc_ref, al_ref,
             o_ref, pad_ref) = refs
        else:
            (x_ref, xh_ref, wp_ref, bp_ref, wc_ref, bc_ref, al_ref,
             o_ref, pad_ref) = refs

        hi = pl.program_id(1)
        nh = pl.num_programs(1)

        wp = wp_ref[...]                 # (cin, c1)   BN scale folded
        bp = bp_ref[...]                 # (1, c1)
        wc = wc_ref[...]                 # (dw*dw, c1) BN scale folded
        bc = bc_ref[...]                 # (1, c1)
        al = al_ref[...]                 # (1, 2) [alpha_primary, alpha_cheap]
        a_p = al[0:1, 0:1]
        a_c = al[0:1, 1:2]

        # ---- primary 1x1 conv + BN + PReLU on the tile and its H-halo rows ----
        x = x_ref[...][0]                # (th, ww, cin)
        x1 = _pointwise(x, wp, bp)
        if use_prelu:
            x1 = _prelu(x1, a_p)

        xh = xh_ref[...][0, 0]           # (2*ph, ww, cin)
        x1h = _pointwise(xh, wp, bp)
        if use_prelu:
            x1h = _prelu(x1h, a_p)
        # zero the halo where it falls outside the image (torch zero-pads x1)
        m_top = (hi > 0).astype(jnp.float32)
        m_bot = (hi < nh - 1).astype(jnp.float32)
        x1_top = x1h[:ph] * m_top
        x1_bot = x1h[ph:] * m_bot

        # ---- zero-padded x1 assembled in a VMEM scratch (no HBM pad) ----
        pad_ref[...] = jnp.zeros((th + 2 * ph, ww + 2 * ph, c1), jnp.float32)
        pad_ref[ph:ph + th, ph:ph + ww, :] = x1
        pad_ref[0:ph, ph:ph + ww, :] = x1_top
        pad_ref[ph + th:ph + th + ph, ph:ph + ww, :] = x1_bot

        # ---- cheap depthwise dw x dw + BN + PReLU (tap-unrolled, VPU) ----
        acc = jnp.zeros((th, ww, c1), jnp.float32)
        for di in range(dw):
            for dj in range(dw):
                t = di * dw + dj
                acc = acc + pad_ref[di:di + th, dj:dj + ww, :] * wc[t:t + 1, :]
        x2 = acc + bc
        if use_prelu:
            x2 = _prelu(x2, a_c)

        out = jnp.concatenate([x1, x2], axis=-1)[:, :, :oup]     # (th, ww, oup)

        if apply_gate:
            # gate logits at (th//2, ww, oup): sigmoid + x2 nearest repeat along H
            g = jax.nn.sigmoid(g_ref[...][0])
            g = jnp.concatenate([g[:, None], g[:, None]], axis=1)
            g = g.reshape(th, ww, oup)
            out = out * g

        o_ref[...] = out[None].astype(o_ref.dtype)

    return kernel


def ghost_main_pallas(x_nhwc, x_halo, gate_lowres, wp, bp, wc, bc, alphas, *,
                      oup, dw, th, use_prelu, apply_gate):
    n, h, ww, cin = x_nhwc.shape
    c1 = wp.shape[1]
    nh = h // th
    ph = dw // 2

    kernel = _make_main_kernel(cin=cin, c1=c1, oup=oup, th=th, ww=ww, dw=dw,
                               use_prelu=use_prelu, apply_gate=apply_gate)

    in_specs = [
        pl.BlockSpec((1, th, ww, cin), lambda ni, hi: (ni, hi, 0, 0)),
        pl.BlockSpec((1, 1, 2 * ph, ww, cin), lambda ni, hi: (ni, hi, 0, 0, 0)),
    ]
    inputs = [x_nhwc, x_halo]
    if apply_gate:
        in_specs.append(pl.BlockSpec((1, th // 2, ww, oup),
                                     lambda ni, hi: (ni, hi, 0, 0)))
        inputs.append(gate_lowres)
    in_specs += [
        pl.BlockSpec((cin, c1), lambda ni, hi: (0, 0)),
        pl.BlockSpec((1, c1), lambda ni, hi: (0, 0)),
        pl.BlockSpec((dw * dw, c1), lambda ni, hi: (0, 0)),
        pl.BlockSpec((1, c1), lambda ni, hi: (0, 0)),
        pl.BlockSpec((1, 2), lambda ni, hi: (0, 0)),
    ]
    inputs += [wp, bp, wc, bc, alphas]

    return pl.pallas_call(
        kernel,
        grid=(n, nh),
        in_specs=in_specs,
        out_specs=pl.BlockSpec((1, th, ww, oup), lambda ni, hi: (ni, hi, 0, 0)),
        out_shape=jax.ShapeDtypeStruct((n, h, ww, oup), jnp.float32),
        scratch_shapes=[pltpu.VMEM((th + 2 * ph, ww + 2 * ph, c1), jnp.float32)],
        compiler_params=pltpu.CompilerParams(
            dimension_semantics=("parallel", "parallel"),
            vmem_limit_bytes=_VMEM_LIMIT),
    )(*inputs)


# ----------------------------------------------------------------------------
# fused attn short_conv kernel at quarter resolution:
# 1x1 conv+BN -> 1x5 depthwise+BN -> 5x1 depthwise+BN (gate logits)
# ----------------------------------------------------------------------------

def _make_attn_kernel(*, cin, oup, h2, w2):
    def kernel(p_ref, w1_ref, b1_ref, w15_ref, b15_ref, w51_ref, b51_ref,
               o_ref, wpad_ref, hpad_ref):
        p = p_ref[...][0]                               # (h2, w2, cin)
        y = _pointwise(p, w1_ref[...], b1_ref[...])     # 1x1 conv + BN

        # 1x5 depthwise along W + BN (zero-pad 2 in VMEM scratch)
        w15 = w15_ref[...]
        wpad_ref[...] = jnp.zeros((h2, w2 + 4, oup), jnp.float32)
        wpad_ref[:, 2:2 + w2, :] = y
        acc = jnp.zeros((h2, w2, oup), jnp.float32)
        for j in range(5):
            acc = acc + wpad_ref[:, j:j + w2, :] * w15[j:j + 1, :]
        y = acc + b15_ref[...]

        # 5x1 depthwise along H + BN
        w51 = w51_ref[...]
        hpad_ref[...] = jnp.zeros((h2 + 4, w2, oup), jnp.float32)
        hpad_ref[2:2 + h2, :, :] = y
        acc = jnp.zeros((h2, w2, oup), jnp.float32)
        for k in range(5):
            acc = acc + hpad_ref[k:k + h2, :, :] * w51[k:k + 1, :]
        y = acc + b51_ref[...]

        # duplicate channels so the caller's free row-major reshape
        # (w2, 2*oup) -> (2*w2, oup) realises the x2 nearest upsample along W
        o_ref[...] = jnp.concatenate([y, y], axis=-1)[None].astype(o_ref.dtype)

    return kernel


def ghost_attn_pallas(pooled, w1, b1, w15, b15, w51, b51):
    n, h2, w2, cin = pooled.shape
    oup = w1.shape[1]
    kernel = _make_attn_kernel(cin=cin, oup=oup, h2=h2, w2=w2)
    out = pl.pallas_call(
        kernel,
        grid=(n,),
        in_specs=[
            pl.BlockSpec((1, h2, w2, cin), lambda ni: (ni, 0, 0, 0)),
            pl.BlockSpec((cin, oup), lambda ni: (0, 0)),
            pl.BlockSpec((1, oup), lambda ni: (0, 0)),
            pl.BlockSpec((5, oup), lambda ni: (0, 0)),
            pl.BlockSpec((1, oup), lambda ni: (0, 0)),
            pl.BlockSpec((5, oup), lambda ni: (0, 0)),
            pl.BlockSpec((1, oup), lambda ni: (0, 0)),
        ],
        out_specs=pl.BlockSpec((1, h2, w2, 2 * oup), lambda ni: (ni, 0, 0, 0)),
        out_shape=jax.ShapeDtypeStruct((n, h2, w2, 2 * oup), jnp.float32),
        scratch_shapes=[pltpu.VMEM((h2, w2 + 4, oup), jnp.float32),
                        pltpu.VMEM((h2 + 4, w2, oup), jnp.float32)],
        compiler_params=pltpu.CompilerParams(
            dimension_semantics=("parallel",),
            vmem_limit_bytes=_VMEM_LIMIT),
    )(pooled, w1, b1, w15, b15, w51, b51)
    # free (row-major) reshape: gate logits nearest-upsampled x2 along W
    return out.reshape(n, h2, 2 * w2, oup)


# ----------------------------------------------------------------------------
# parameter init (deterministic, synthetic; BN in eval form) + forward
# ----------------------------------------------------------------------------

def _bn_fold(key, c, eps=1e-5):
    k1, k2, k3, k4 = jax.random.split(key, 4)
    gamma = 1.0 + 0.1 * jax.random.normal(k1, (c,))
    beta = 0.1 * jax.random.normal(k2, (c,))
    mean = 0.1 * jax.random.normal(k3, (c,))
    var = 1.0 + 0.1 * jnp.abs(jax.random.normal(k4, (c,)))
    scale = gamma / jnp.sqrt(var + eps)
    shift = beta - mean * scale
    return scale.astype(jnp.float32), shift.astype(jnp.float32)


def init_ghost_module_v2(key, inp, oup, kernel_size=1, ratio=2, dw_size=3):
    # TODO(synk): only kernel_size=1, stride=1, ratio=2 (module defaults) supported.
    assert kernel_size == 1 and ratio == 2
    init_ch = math.ceil(oup / ratio)
    ks = jax.random.split(key, 10)
    return {
        'oup': oup,
        'dw_size': dw_size,
        'w_primary': (0.3 * jax.random.normal(ks[0], (inp, init_ch))).astype(jnp.float32),
        'bn_primary': _bn_fold(ks[1], init_ch),
        'alpha_primary': jnp.float32(0.25),
        'w_cheap': (0.3 * jax.random.normal(ks[2], (dw_size, dw_size, init_ch))).astype(jnp.float32),
        'bn_cheap': _bn_fold(ks[3], init_ch),
        'alpha_cheap': jnp.float32(0.25),
        'w_sc1': (0.3 * jax.random.normal(ks[4], (inp, oup))).astype(jnp.float32),
        'bn_sc1': _bn_fold(ks[5], oup),
        'w_sc2': (0.3 * jax.random.normal(ks[6], (1, 5, oup))).astype(jnp.float32),
        'bn_sc2': _bn_fold(ks[7], oup),
        'w_sc3': (0.3 * jax.random.normal(ks[8], (5, 1, oup))).astype(jnp.float32),
        'bn_sc3': _bn_fold(ks[9], oup),
    }


def _pick_tile_h(h):
    # biggest of {32, 16, 8} that divides h with >= 2 tiles, else the full height
    for th in (32, 16, 8):
        if h % th == 0 and h // th >= 2:
            return th
    return h


def ghost_module_v2_forward(params, x_nchw, mode='attn', prelu=True):
    oup = params['oup']
    dw = params['dw_size']
    x = jnp.transpose(x_nchw, (0, 2, 3, 1)).astype(jnp.float32)     # NHWC
    n, h, ww, cin = x.shape
    # TODO(synk): odd H/W (avg_pool2d floor + nearest resize of odd sizes) unsupported.
    assert h % 2 == 0 and ww % 2 == 0
    th = _pick_tile_h(h)
    nh = h // th
    ph = dw // 2

    # fold BN scale into the conv weights (shift stays a per-channel add)
    sp, bp = params['bn_primary']
    wp = params['w_primary'] * sp[None, :]
    sc, bc = params['bn_cheap']
    wc = (params['w_cheap'] * sc[None, None, :]).reshape(dw * dw, -1)
    alphas = jnp.stack([params['alpha_primary'],
                        params['alpha_cheap']]).reshape(1, 2).astype(jnp.float32)

    # tiny glue gather: the ph rows just above/below each H-tile (clipped; the
    # kernel zeroes them at the image border) -- replaces HBM-level jnp.pad.
    offs = jnp.concatenate([jnp.arange(-ph, 0), jnp.arange(th, th + ph)])
    rows = (jnp.arange(nh) * th)[:, None] + offs[None, :]
    x_halo = x[:, jnp.clip(rows, 0, h - 1)]          # (n, nh, 2*ph, ww, cin)

    gate_lowres = None
    if mode == 'attn':
        pooled = x.reshape(n, h // 2, 2, ww // 2, 2, cin).mean(axis=(2, 4))
        s1, b1 = params['bn_sc1']
        w1 = params['w_sc1'] * s1[None, :]
        s2, b2 = params['bn_sc2']
        w15 = (params['w_sc2'] * s2[None, None, :]).reshape(5, oup)
        s3, b3 = params['bn_sc3']
        w51 = (params['w_sc3'] * s3[None, None, :]).reshape(5, oup)
        gate_lowres = ghost_attn_pallas(pooled, w1, b1.reshape(1, oup),
                                        w15, b2.reshape(1, oup),
                                        w51, b3.reshape(1, oup))

    out = ghost_main_pallas(x, x_halo, gate_lowres,
                            wp, bp.reshape(1, -1), wc, bc.reshape(1, -1), alphas,
                            oup=oup, dw=dw, th=th, use_prelu=prelu,
                            apply_gate=(mode == 'attn'))
    return jnp.transpose(out, (0, 3, 1, 2))


# ----------------------------------------------------------------------------
# pure-JAX reference (independent of the Pallas kernels)
# ----------------------------------------------------------------------------

def _ref_pw(x, w, scale, shift, alpha, use_prelu):
    y = jnp.einsum('nhwc,cd->nhwd', x, w) * scale + shift
    return jnp.where(y >= 0, y, alpha * y) if use_prelu else y


def _ref_dw(x, w, scale, shift, alpha, kh, kw, use_prelu):
    c = x.shape[-1]
    y = jax.lax.conv_general_dilated(
        x, w.reshape(kh, kw, 1, c), window_strides=(1, 1),
        padding=((kh // 2, kh // 2), (kw // 2, kw // 2)),
        dimension_numbers=('NHWC', 'HWIO', 'NHWC'),
        feature_group_count=c)
    y = y * scale + shift
    return jnp.where(y >= 0, y, alpha * y) if use_prelu else y


def _upsample_nearest(x, h_out, w_out):
    n, h_in, w_in, c = x.shape
    hi = (jnp.arange(h_out) * h_in) // h_out
    wi = (jnp.arange(w_out) * w_in) // w_out
    return x[:, hi][:, :, wi]


def ghost_module_v2_reference(params, x_nchw, mode='attn', prelu=True):
    oup = params['oup']
    dw = params['dw_size']
    x = jnp.transpose(x_nchw, (0, 2, 3, 1)).astype(jnp.float32)
    s, b = params['bn_primary']
    x1 = _ref_pw(x, params['w_primary'], s, b, params['alpha_primary'], prelu)
    s, b = params['bn_cheap']
    x2 = _ref_dw(x1, params['w_cheap'], s, b, params['alpha_cheap'], dw, dw, prelu)
    out = jnp.concatenate([x1, x2], axis=-1)[..., :oup]
    if mode == 'original':
        return jnp.transpose(out, (0, 3, 1, 2))
    n, h, w, cin = x.shape
    pooled = x.reshape(n, h // 2, 2, w // 2, 2, cin).mean(axis=(2, 4))
    s, b = params['bn_sc1']
    r = _ref_pw(pooled, params['w_sc1'], s, b, 0.0, False)
    s, b = params['bn_sc2']
    r = _ref_dw(r, params['w_sc2'], s, b, 0.0, 1, 5, False)
    s, b = params['bn_sc3']
    r = _ref_dw(r, params['w_sc3'], s, b, 0.0, 5, 1, False)
    gate = _upsample_nearest(jax.nn.sigmoid(r), out.shape[1], out.shape[2])
    return jnp.transpose(out * gate, (0, 3, 1, 2))


# ----------------------------------------------------------------------------
# main
# ----------------------------------------------------------------------------

if __name__ == "__main__":
    key = jax.random.PRNGKey(0)
    kx, kp = jax.random.split(key)

    N, Cin, H, W = 2, 4, 16, 16
    OUP = 8
    x = jax.random.normal(kx, (N, Cin, H, W), jnp.float32)
    params = init_ghost_module_v2(kp, Cin, OUP, kernel_size=1, ratio=2, dw_size=3)

    ok = True
    for mode in ('attn', 'original'):
        y = jax.block_until_ready(ghost_module_v2_forward(params, x, mode=mode))
        y_ref = jax.block_until_ready(ghost_module_v2_reference(params, x, mode=mode))
        assert y.shape == (N, OUP, H, W), (mode, y.shape)
        err = float(jnp.max(jnp.abs(y - y_ref)))
        if not (err < 2e-3):
            ok = False
            print(f"mode={mode} max abs err {err}")

    if ok:
        print("KERNEL_OK")
</pallas_src>

<mosaic_0001>
module attributes {stable_mosaic.version = 11 : i64} {
  func.func @kernel(%arg0: i32, %arg1: memref<1x8x8x4xf32, #tpu.memory_space<vmem>>, %arg2: memref<4x8xf32, #tpu.memory_space<vmem>>, %arg3: memref<1x8xf32, #tpu.memory_space<vmem>>, %arg4: memref<5x8xf32, #tpu.memory_space<vmem>>, %arg5: memref<1x8xf32, #tpu.memory_space<vmem>>, %arg6: memref<5x8xf32, #tpu.memory_space<vmem>>, %arg7: memref<1x8xf32, #tpu.memory_space<vmem>>, %arg8: memref<1x8x8x16xf32, #tpu.memory_space<vmem>>, %arg9: memref<8x12x8xf32, #tpu.memory_space<vmem>>, %arg10: memref<12x8x8xf32, #tpu.memory_space<vmem>>) attributes {dimension_semantics = [#tpu.dimension_semantics<parallel>], iteration_bounds = array<i64: 2>, scalar_prefetch = 0 : i64, scratch_operands = 2 : i64, tpu.core_type = #tpu.core_type<tc>, window_params = [{transform_indices = @transform_0, window_bounds = array<i64: 1, 8, 8, 4>}, {pipeline_mode = #tpu.pipeline_mode<synchronous>, transform_indices = @transform_1, window_bounds = array<i64: 4, 8>}, {pipeline_mode = #tpu.pipeline_mode<synchronous>, transform_indices = @transform_2, window_bounds = array<i64: 1, 8>}, {pipeline_mode = #tpu.pipeline_mode<synchronous>, transform_indices = @transform_3, window_bounds = array<i64: 5, 8>}, {pipeline_mode = #tpu.pipeline_mode<synchronous>, transform_indices = @transform_4, window_bounds = array<i64: 1, 8>}, {pipeline_mode = #tpu.pipeline_mode<synchronous>, transform_indices = @transform_5, window_bounds = array<i64: 5, 8>}, {pipeline_mode = #tpu.pipeline_mode<synchronous>, transform_indices = @transform_6, window_bounds = array<i64: 1, 8>}, {transform_indices = @transform_7, window_bounds = array<i64: 1, 8, 8, 16>}]} {
    %c0 = arith.constant 0 : index
    %c0_0 = arith.constant 0 : index
    %c0_1 = arith.constant 0 : index
    %c0_2 = arith.constant 0 : index
    %0 = vector.load %arg1[%c0, %c0_0, %c0_1, %c0_2] : memref<1x8x8x4xf32, #tpu.memory_space<vmem>>, vector<1x8x8x4xf32>
    %1 = vector.shape_cast %0 : vector<1x8x8x4xf32> to vector<8x8x4xf32>
    %c0_3 = arith.constant 0 : index
    %c0_4 = arith.constant 0 : index
    %2 = vector.load %arg2[%c0_3, %c0_4] : memref<4x8xf32, #tpu.memory_space<vmem>>, vector<4x8xf32>
    %c0_5 = arith.constant 0 : index
    %c0_6 = arith.constant 0 : index
    %3 = vector.load %arg3[%c0_5, %c0_6] : memref<1x8xf32, #tpu.memory_space<vmem>>, vector<1x8xf32>
    %cst = arith.constant 0.000000e+00 : f32
    %4 = vector.broadcast %cst : f32 to vector<8x8x8xf32>
    %5 = vector.extract_strided_slice %1 {offsets = [0, 0, 0], sizes = [8, 8, 1], strides = [1, 1, 1]} : vector<8x8x4xf32> to vector<8x8x1xf32>
    %6 = vector.extract_strided_slice %2 {offsets = [0, 0], sizes = [1, 8], strides = [1, 1]} : vector<4x8xf32> to vector<1x8xf32>
    %7 = vector.shape_cast %6 : vector<1x8xf32> to vector<1x1x8xf32>
    %8 = vector.broadcast %5 : vector<8x8x1xf32> to vector<8x8x8xf32>
    %9 = vector.broadcast %7 : vector<1x1x8xf32> to vector<8x8x8xf32>
    %10 = arith.mulf %8, %9 : vector<8x8x8xf32>
    %11 = arith.addf %4, %10 : vector<8x8x8xf32>
    %12 = vector.extract_strided_slice %1 {offsets = [0, 0, 1], sizes = [8, 8, 1], strides = [1, 1, 1]} : vector<8x8x4xf32> to vector<8x8x1xf32>
    %13 = vector.extract_strided_slice %2 {offsets = [1, 0], sizes = [1, 8], strides = [1, 1]} : vector<4x8xf32> to vector<1x8xf32>
    %14 = vector.shape_cast %13 : vector<1x8xf32> to vector<1x1x8xf32>
    %15 = vector.broadcast %12 : vector<8x8x1xf32> to vector<8x8x8xf32>
    %16 = vector.broadcast %14 : vector<1x1x8xf32> to vector<8x8x8xf32>
    %17 = arith.mulf %15, %16 : vector<8x8x8xf32>
    %18 = arith.addf %11, %17 : vector<8x8x8xf32>
    %19 = vector.extract_strided_slice %1 {offsets = [0, 0, 2], sizes = [8, 8, 1], strides = [1, 1, 1]} : vector<8x8x4xf32> to vector<8x8x1xf32>
    %20 = vector.extract_strided_slice %2 {offsets = [2, 0], sizes = [1, 8], strides = [1, 1]} : vector<4x8xf32> to vector<1x8xf32>
    %21 = vector.shape_cast %20 : vector<1x8xf32> to vector<1x1x8xf32>
    %22 = vector.broadcast %19 : vector<8x8x1xf32> to vector<8x8x8xf32>
    %23 = vector.broadcast %21 : vector<1x1x8xf32> to vector<8x8x8xf32>
    %24 = arith.mulf %22, %23 : vector<8x8x8xf32>
    %25 = arith.addf %18, %24 : vector<8x8x8xf32>
    %26 = vector.extract_strided_slice %1 {offsets = [0, 0, 3], sizes = [8, 8, 1], strides = [1, 1, 1]} : vector<8x8x4xf32> to vector<8x8x1xf32>
    %27 = vector.extract_strided_slice %2 {offsets = [3, 0], sizes = [1, 8], strides = [1, 1]} : vector<4x8xf32> to vector<1x8xf32>
    %28 = vector.shape_cast %27 : vector<1x8xf32> to vector<1x1x8xf32>
    %29 = vector.broadcast %26 : vector<8x8x1xf32> to vector<8x8x8xf32>
    %30 = vector.broadcast %28 : vector<1x1x8xf32> to vector<8x8x8xf32>
    %31 = arith.mulf %29, %30 : vector<8x8x8xf32>
    %32 = arith.addf %25, %31 : vector<8x8x8xf32>
    %33 = vector.shape_cast %3 : vector<1x8xf32> to vector<1x1x8xf32>
    %34 = vector.broadcast %33 : vector<1x1x8xf32> to vector<8x8x8xf32>
    %35 = arith.addf %32, %34 : vector<8x8x8xf32>
    %c0_7 = arith.constant 0 : index
    %c0_8 = arith.constant 0 : index
    %36 = vector.load %arg4[%c0_7, %c0_8] : memref<5x8xf32, #tpu.memory_space<vmem>>, vector<5x8xf32>
    %cst_9 = arith.constant 0.000000e+00 : f32
    %37 = vector.broadcast %cst_9 : f32 to vector<8x12x8xf32>
    %c0_10 = arith.constant 0 : index
    %c0_11 = arith.constant 0 : index
    %c0_12 = arith.constant 0 : index
    %38 = vector.load %arg9[%c0_10, %c0_11, %c0_12] : memref<8x12x8xf32, #tpu.memory_space<vmem>>, vector<8x12x8xf32>
    tpu.vector_store %arg9[%c0_10, %c0_11, %c0_12], %37 {strides = array<i32>} : memref<8x12x8xf32, #tpu.memory_space<vmem>>, vector<8x12x8xf32>,
    %c0_13 = arith.constant 0 : index
    %c2 = arith.constant 2 : index
    %c0_14 = arith.constant 0 : index
    %39 = vector.load %arg9[%c0_13, %c2, %c0_14] : memref<8x12x8xf32, #tpu.memory_space<vmem>>, vector<8x8x8xf32>
    tpu.vector_store %arg9[%c0_13, %c2, %c0_14], %35 {strides = array<i32>} : memref<8x12x8xf32, #tpu.memory_space<vmem>>, vector<8x8x8xf32>,
    %cst_15 = arith.constant 0.000000e+00 : f32
    %40 = vector.broadcast %cst_15 : f32 to vector<8x8x8xf32>
    %c0_16 = arith.constant 0 : index
    %c0_17 = arith.constant 0 : index
    %c0_18 = arith.constant 0 : index
    %41 = vector.load %arg9[%c0_16, %c0_17, %c0_18] : memref<8x12x8xf32, #tpu.memory_space<vmem>>, vector<8x8x8xf32>
    %42 = vector.extract_strided_slice %36 {offsets = [0, 0], sizes = [1, 8], strides = [1, 1]} : vector<5x8xf32> to vector<1x8xf32>
    %43 = vector.shape_cast %42 : vector<1x8xf32> to vector<1x1x8xf32>
    %44 = vector.broadcast %43 : vector<1x1x8xf32> to vector<8x8x8xf32>
    %45 = arith.mulf %41, %44 : vector<8x8x8xf32>
    %46 = arith.addf %40, %45 : vector<8x8x8xf32>
    %c0_19 = arith.constant 0 : index
    %c1 = arith.constant 1 : index
    %c0_20 = arith.constant 0 : index
    %47 = vector.load %arg9[%c0_19, %c1, %c0_20] : memref<8x12x8xf32, #tpu.memory_space<vmem>>, vector<8x8x8xf32>
    %48 = vector.extract_strided_slice %36 {offsets = [1, 0], sizes = [1, 8], strides = [1, 1]} : vector<5x8xf32> to vector<1x8xf32>
    %49 = vector.shape_cast %48 : vector<1x8xf32> to vector<1x1x8xf32>
    %50 = vector.broadcast %49 : vector<1x1x8xf32> to vector<8x8x8xf32>
    %51 = arith.mulf %47, %50 : vector<8x8x8xf32>
    %52 = arith.addf %46, %51 : vector<8x8x8xf32>
    %c0_21 = arith.constant 0 : index
    %c2_22 = arith.constant 2 : index
    %c0_23 = arith.constant 0 : index
    %53 = vector.load %arg9[%c0_21, %c2_22, %c0_23] : memref<8x12x8xf32, #tpu.memory_space<vmem>>, vector<8x8x8xf32>
    %54 = vector.extract_strided_slice %36 {offsets = [2, 0], sizes = [1, 8], strides = [1, 1]} : vector<5x8xf32> to vector<1x8xf32>
    %55 = vector.shape_cast %54 : vector<1x8xf32> to vector<1x1x8xf32>
    %56 = vector.broadcast %55 : vector<1x1x8xf32> to vector<8x8x8xf32>
    %57 = arith.mulf %53, %56 : vector<8x8x8xf32>
    %58 = arith.addf %52, %57 : vector<8x8x8xf32>
    %c0_24 = arith.constant 0 : index
    %c3 = arith.constant 3 : index
    %c0_25 = arith.constant 0 : index
    %59 = vector.load %arg9[%c0_24, %c3, %c0_25] : memref<8x12x8xf32, #tpu.memory_space<vmem>>, vector<8x8x8xf32>
    %60 = vector.extract_strided_slice %36 {offsets = [3, 0], sizes = [1, 8], strides = [1, 1]} : vector<5x8xf32> to vector<1x8xf32>
    %61 = vector.shape_cast %60 : vector<1x8xf32> to vector<1x1x8xf32>
    %62 = vector.broadcast %61 : vector<1x1x8xf32> to vector<8x8x8xf32>
    %63 = arith.mulf %59, %62 : vector<8x8x8xf32>
    %64 = arith.addf %58, %63 : vector<8x8x8xf32>
    %c0_26 = arith.constant 0 : index
    %c4 = arith.constant 4 : index
    %c0_27 = arith.constant 0 : index
    %65 = vector.load %arg9[%c0_26, %c4, %c0_27] : memref<8x12x8xf32, #tpu.memory_space<vmem>>, vector<8x8x8xf32>
    %66 = vector.extract_strided_slice %36 {offsets = [4, 0], sizes = [1, 8], strides = [1, 1]} : vector<5x8xf32> to vector<1x8xf32>
    %67 = vector.shape_cast %66 : vector<1x8xf32> to vector<1x1x8xf32>
    %68 = vector.broadcast %67 : vector<1x1x8xf32> to vector<8x8x8xf32>
    %69 = arith.mulf %65, %68 : vector<8x8x8xf32>
    %70 = arith.addf %64, %69 : vector<8x8x8xf32>
    %c0_28 = arith.constant 0 : index
    %c0_29 = arith.constant 0 : index
    %71 = vector.load %arg5[%c0_28, %c0_29] : memref<1x8xf32, #tpu.memory_space<vmem>>, vector<1x8xf32>
    %72 = vector.shape_cast %71 : vector<1x8xf32> to vector<1x1x8xf32>
    %73 = vector.broadcast %72 : vector<1x1x8xf32> to vector<8x8x8xf32>
    %74 = arith.addf %70, %73 : vector<8x8x8xf32>
    %c0_30 = arith.constant 0 : index
    %c0_31 = arith.constant 0 : index
    %75 = vector.load %arg6[%c0_30, %c0_31] : memref<5x8xf32, #tpu.memory_space<vmem>>, vector<5x8xf32>
    %cst_32 = arith.constant 0.000000e+00 : f32
    %76 = vector.broadcast %cst_32 : f32 to vector<12x8x8xf32>
    %c0_33 = arith.constant 0 : index
    %c0_34 = arith.constant 0 : index
    %c0_35 = arith.constant 0 : index
    %77 = vector.load %arg10[%c0_33, %c0_34, %c0_35] : memref<12x8x8xf32, #tpu.memory_space<vmem>>, vector<12x8x8xf32>
    tpu.vector_store %arg10[%c0_33, %c0_34, %c0_35], %76 {strides = array<i32>} : memref<12x8x8xf32, #tpu.memory_space<vmem>>, vector<12x8x8xf32>,
    %c2_36 = arith.constant 2 : index
    %c0_37 = arith.constant 0 : index
    %c0_38 = arith.constant 0 : index
    %78 = vector.load %arg10[%c2_36, %c0_37, %c0_38] : memref<12x8x8xf32, #tpu.memory_space<vmem>>, vector<8x8x8xf32>
    tpu.vector_store %arg10[%c2_36, %c0_37, %c0_38], %74 {strides = array<i32>} : memref<12x8x8xf32, #tpu.memory_space<vmem>>, vector<8x8x8xf32>,
    %cst_39 = arith.constant 0.000000e+00 : f32
    %79 = vector.broadcast %cst_39 : f32 to vector<8x8x8xf32>
    %c0_40 = arith.constant 0 : index
    %c0_41 = arith.constant 0 : index
    %c0_42 = arith.constant 0 : index
    %80 = vector.load %arg10[%c0_40, %c0_41, %c0_42] : memref<12x8x8xf32, #tpu.memory_space<vmem>>, vector<8x8x8xf32>
    %81 = vector.extract_strided_slice %75 {offsets = [0, 0], sizes = [1, 8], strides = [1, 1]} : vector<5x8xf32> to vector<1x8xf32>
    %82 = vector.shape_cast %81 : vector<1x8xf32> to vector<1x1x8xf32>
    %83 = vector.broadcast %82 : vector<1x1x8xf32> to vector<8x8x8xf32>
    %84 = arith.mulf %80, %83 : vector<8x8x8xf32>
    %85 = arith.addf %79, %84 : vector<8x8x8xf32>
    %c1_43 = arith.constant 1 : index
    %c0_44 = arith.constant 0 : index
    %c0_45 = arith.constant 0 : index
    %86 = vector.load %arg10[%c1_43, %c0_44, %c0_45] : memref<12x8x8xf32, #tpu.memory_space<vmem>>, vector<8x8x8xf32>
    %87 = vector.extract_strided_slice %75 {offsets = [1, 0], sizes = [1, 8], strides = [1, 1]} : vector<5x8xf32> to vector<1x8xf32>
    %88 = vector.shape_cast %87 : vector<1x8xf32> to vector<1x1x8xf32>
    %89 = vector.broadcast %88 : vector<1x1x8xf32> to vector<8x8x8xf32>
    %90 = arith.mulf %86, %89 : vector<8x8x8xf32>
    %91 = arith.addf %85, %90 : vector<8x8x8xf32>
    %c2_46 = arith.constant 2 : index
    %c0_47 = arith.constant 0 : index
    %c0_48 = arith.constant 0 : index
    %92 = vector.load %arg10[%c2_46, %c0_47, %c0_48] : memref<12x8x8xf32, #tpu.memory_space<vmem>>, vector<8x8x8xf32>
    %93 = vector.extract_strided_slice %75 {offsets = [2, 0], sizes = [1, 8], strides = [1, 1]} : vector<5x8xf32> to vector<1x8xf32>
    %94 = vector.shape_cast %93 : vector<1x8xf32> to vector<1x1x8xf32>
    %95 = vector.broadcast %94 : vector<1x1x8xf32> to vector<8x8x8xf32>
    %96 = arith.mulf %92, %95 : vector<8x8x8xf32>
    %97 = arith.addf %91, %96 : vector<8x8x8xf32>
    %c3_49 = arith.constant 3 : index
    %c0_50 = arith.constant 0 : index
    %c0_51 = arith.constant 0 : index
    %98 = vector.load %arg10[%c3_49, %c0_50, %c0_51] : memref<12x8x8xf32, #tpu.memory_space<vmem>>, vector<8x8x8xf32>
    %99 = vector.extract_strided_slice %75 {offsets = [3, 0], sizes = [1, 8], strides = [1, 1]} : vector<5x8xf32> to vector<1x8xf32>
    %100 = vector.shape_cast %99 : vector<1x8xf32> to vector<1x1x8xf32>
    %101 = vector.broadcast %100 : vector<1x1x8xf32> to vector<8x8x8xf32>
    %102 = arith.mulf %98, %101 : vector<8x8x8xf32>
    %103 = arith.addf %97, %102 : vector<8x8x8xf32>
    %c4_52 = arith.constant 4 : index
    %c0_53 = arith.constant 0 : index
    %c0_54 = arith.constant 0 : index
    %104 = vector.load %arg10[%c4_52, %c0_53, %c0_54] : memref<12x8x8xf32, #tpu.memory_space<vmem>>, vector<8x8x8xf32>
    %105 = vector.extract_strided_slice %75 {offsets = [4, 0], sizes = [1, 8], strides = [1, 1]} : vector<5x8xf32> to vector<1x8xf32>
    %106 = vector.shape_cast %105 : vector<1x8xf32> to vector<1x1x8xf32>
    %107 = vector.broadcast %106 : vector<1x1x8xf32> to vector<8x8x8xf32>
    %108 = arith.mulf %104, %107 : vector<8x8x8xf32>
    %109 = arith.addf %103, %108 : vector<8x8x8xf32>
    %c0_55 = arith.constant 0 : index
    %c0_56 = arith.constant 0 : index
    %110 = vector.load %arg7[%c0_55, %c0_56] : memref<1x8xf32, #tpu.memory_space<vmem>>, vector<1x8xf32>
    %111 = vector.shape_cast %110 : vector<1x8xf32> to vector<1x1x8xf32>
    %112 = vector.broadcast %111 : vector<1x1x8xf32> to vector<8x8x8xf32>
    %113 = arith.addf %109, %112 : vector<8x8x8xf32>
    %114 = tpu.concatenate %113, %113 in 2 : vector<8x8x8xf32>, vector<8x8x8xf32> -> vector<8x8x16xf32>
    %115 = vector.shape_cast %114 : vector<8x8x16xf32> to vector<1x8x8x16xf32>
    %c0_57 = arith.constant 0 : index
    %c0_58 = arith.constant 0 : index
    %c0_59 = arith.constant 0 : index
    %c0_60 = arith.constant 0 : index
    %116 = vector.load %arg8[%c0_57, %c0_58, %c0_59, %c0_60] : memref<1x8x8x16xf32, #tpu.memory_space<vmem>>, vector<1x8x8x16xf32>
    tpu.vector_store %arg8[%c0_57, %c0_58, %c0_59, %c0_60], %115 {strides = array<i32>} : memref<1x8x8x16xf32, #tpu.memory_space<vmem>>, vector<1x8x8x16xf32>,
    return
  }
  func.func @transform_0(%arg0: i32) -> (i32, i32, i32, i32) {
    %c0_i32 = arith.constant 0 : i32
    %c0_i32_0 = arith.constant 0 : i32
    %c0_i32_1 = arith.constant 0 : i32
    %c0_i32_2 = arith.constant 0 : i32
    return %arg0, %c0_i32, %c0_i32_0, %c0_i32_1 : i32, i32, i32, i32
  }
  func.func @transform_1(%arg0: i32) -> (i32, i32) {
    %c0_i32 = arith.constant 0 : i32
    %c0_i32_0 = arith.constant 0 : i32
    %c0_i32_1 = arith.constant 0 : i32
    return %c0_i32, %c0_i32_0 : i32, i32
  }
  func.func @transform_2(%arg0: i32) -> (i32, i32) {
    %c0_i32 = arith.constant 0 : i32
    %c0_i32_0 = arith.constant 0 : i32
    %c0_i32_1 = arith.constant 0 : i32
    return %c0_i32, %c0_i32_0 : i32, i32
  }
  func.func @transform_3(%arg0: i32) -> (i32, i32) {
    %c0_i32 = arith.constant 0 : i32
    %c0_i32_0 = arith.constant 0 : i32
    %c0_i32_1 = arith.constant 0 : i32
    return %c0_i32, %c0_i32_0 : i32, i32
  }
  func.func @transform_4(%arg0: i32) -> (i32, i32) {
    %c0_i32 = arith.constant 0 : i32
    %c0_i32_0 = arith.constant 0 : i32
    %c0_i32_1 = arith.constant 0 : i32
    return %c0_i32, %c0_i32_0 : i32, i32
  }
  func.func @transform_5(%arg0: i32) -> (i32, i32) {
    %c0_i32 = arith.constant 0 : i32
    %c0_i32_0 = arith.constant 0 : i32
    %c0_i32_1 = arith.constant 0 : i32
    return %c0_i32, %c0_i32_0 : i32, i32
  }
  func.func @transform_6(%arg0: i32) -> (i32, i32) {
    %c0_i32 = arith.constant 0 : i32
    %c0_i32_0 = arith.constant 0 : i32
    %c0_i32_1 = arith.constant 0 : i32
    return %c0_i32, %c0_i32_0 : i32, i32
  }
  func.func @transform_7(%arg0: i32) -> (i32, i32, i32, i32) {
    %c0_i32 = arith.constant 0 : i32
    %c0_i32_0 = arith.constant 0 : i32
    %c0_i32_1 = arith.constant 0 : i32
    %c0_i32_2 = arith.constant 0 : i32
    return %arg0, %c0_i32, %c0_i32_0, %c0_i32_1 : i32, i32, i32, i32
  }
}

</mosaic_0001>

<bundles_post_ra>
// kernel: tpu_custom_call.1
= control target key start
LH: loop header
LB: loop body
LE: loop exit
PB: predicated region body
PF: predicated region fallthrough
CT: control target
= control target key end

     0   :  { %12 = vsyncpa [#allocation5], 0  ;;  %s1653_s0 = inlined_call_operand.vmem [shape: f32[2,8,8,4], index: 0, kind: input, shape index: {}]   ;;  %s1654_s1 = inlined_call_operand.vmem [shape: f32[4,8], index: 1, kind: input, shape index: {}]   ;;  %s1655_s2 = inlined_call_operand.vmem [shape: f32[1,8], index: 2, kind: input, shape index: {}]   ;;  %s1656_s3 = inlined_call_operand.vmem [shape: f32[5,8], index: 3, kind: input, shape index: {}]   ;;  %s1657_s4 = inlined_call_operand.vmem [shape: f32[1,8], index: 4, kind: input, shape index: {}]   ;;  %s1658_s5 = inlined_call_operand.vmem [shape: f32[5,8], index: 5, kind: input, shape index: {}]   ;;  %s1659_s6 = inlined_call_operand.vmem [shape: f32[1,8], index: 6, kind: input, shape index: {}]   ;;  %s1660_s7 = inlined_call_operand.hbm [shape: f32[2,8,8,16], index: 7, kind: output, shape index: {}]  }
   0x1   :  { %14 = vsyncpa [#allocation5 + $0x1], 0  ;;  %s1188_s24 = smov 0   ;;  %s1190_s25 = smov 0  }
   0x2   :  { %s1192_s26 = smov 0   ;;  %s1194_s27 = smov 0  }
   0x3 LB: > { %s1209_s28 = sadd.s32 4294967295, %s1138_s27   ;;  %s1004_s29 = sadd.s32 4294967294, %s1138_s27   ;;  %s1138_s27 = sphi %s1194_s27, %s1666_s27   ;;  %s1134_s26 = sphi %s1192_s26, %s1665_s26   ;;  %s1130_s25 = sphi %s1190_s25, %s1664_s25   ;;  %s1126_s24 = sphi %s1188_s24, %s1663_s24  }
   0x4   : > { %s1213_s30 = sadd.s32 1, %s1138_s27   ;;  %s179_s8 = sadd.s32 1, %s1134_s26 }
   0x5   : > { %s176_s9 = ssub.s32 %s1138_s27, %s1213_s30  ;;  %p189_p0 = scmp.ne.s32.totalorder %s1134_s26, %s1130_s25 }
   0x6   : > { %p177_p1 = scmp.eq.s32.totalorder %s176_s9, 0  ;;  %p190_p2 = scmp.eq.s32.totalorder %s1209_s28, 1 }
   0x7   : > { %p195_p3 = scmp.ne.s32.totalorder %s1130_s25, %s1126_s24  ;;  %p196_p4 = scmp.eq.s32.totalorder %s1004_s29, 1 }
   0x8   : > { %s1224_s10 = scalar_select %p177_p1, %s1134_s26, %s179_s8  }
   0x9   : > { %p1226_p5 = por %p190_p2, %p189_p0  ;;  %p1230_p6 = por %p196_p4, %p195_p3 }
   0xa   : > { %p1007_p7 = scmp.ge.s32.totalorder %s1138_s27, 1  ;;  %p240_p8 = scmp.lt.s32.totalorder %s1138_s27, 3 }
   0xc   : > { %p241_p9 = pnand %p1007_p7, %p240_p8 }
   0xd   : > { %p272_p10 = scmp.lt.s32.totalorder (!%p241_p9), %s1209_s28, 1  ;;  %v1140_v0 = vmov (!%p241_p9), 0   ;;  %v1141_v8 = vmov (!%p241_p9), 1   ;;  %v1142_v10 = vmov (!%p241_p9), 2   ;;  %v1143_v11 = vmov (!%p241_p9), 3   ;;  %s1145_s16 = smov (!%p241_p9), 8  }
   0xe   : > { %244 = sbr.rel (%p241_p9) target bundleno = 403 (0x193), region = 48  ;;  %1068 = vset.pattern.permute.xlu1 (!%p241_p9), %v1140_v0  ;;  %1067 = vset.pattern.permute.xlu0 (!%p241_p9), %v1140_v0  ;;  %vm518_vm0 = vcmask (!%p241_p9), 64512   ;;  %vm520_vm1 = vcmask (!%p241_p9), 60416   ;;  %v1144_v12 = vmov (!%p241_p9), 0.0   ;;  %v327_v27 = vlaneseq (!%p241_p9)  ;;  %v285_v35 = vld [vmem:[%s1654_s1] sm:$0xf] (!%p241_p9) }
   0xf   : > { %519 = vst.msk [vmem:[#allocation2] sm:$0xff] (!%p241_p9), %vm518_vm0, %v1144_v12  ;;  %522 = vst.msk [vmem:[#allocation2 + $0x10] sm:$0xff] (!%p241_p9), %vm518_vm0, %v1144_v12  ;;  %v1358_v57 = vld [vmem:[%s1655_s2] ss:$0 sm:$0xff] (!%p241_p9)  ;;  %vm919_vm2 = vcmask (!%p241_p9), 130048   ;;  %s1020_s20 = sshll.u32 (!%p241_p9), %s1209_s28, 10 }
  0x10   : > { %521 = vst.msk [vmem:[#allocation2 + $0x8] sm:$0xf] (!%p241_p9), %vm520_vm1, %v1144_v12  ;;  %523 = vst.msk [vmem:[#allocation2 + $0x18] sm:$0xf] (!%p241_p9), %vm520_vm1, %v1144_v12  ;;  %v1315_v30 = vshrl.u32 (!%p241_p9), %v327_v27, 7  ;;  %s1603_s29 = scalar_lea.hbm (!%p241_p9), %s1660_s7, %s1020_s20  ;;  %s1146_s9 = smov (!%p241_p9), [#allocation4]  }
  0x11   : > { %524 = vst.msk [vmem:[#allocation2 + $0x20] sm:$0xff] (!%p241_p9), %vm518_vm0, %v1144_v12  ;;  %526 = vst.msk [vmem:[#allocation2 + $0x30] sm:$0xff] (!%p241_p9), %vm518_vm0, %v1144_v12 }
  0x12   : > { %525 = vst.msk [vmem:[#allocation2 + $0x28] sm:$0xf] (!%p241_p9), %vm520_vm1, %v1144_v12  ;;  %527 = vst.msk [vmem:[#allocation2 + $0x38] sm:$0xf] (!%p241_p9), %vm520_vm1, %v1144_v12  ;;  %v1318_v31 = vsub.s32 (!%p241_p9), 1, %v1315_v30  ;;  %v1321_v34 = vsub.s32 (!%p241_p9), 2, %v1315_v30 }
  0x13   : > { %528 = vst.msk [vmem:[#allocation2 + $0x40] sm:$0xff] (!%p241_p9), %vm518_vm0, %v1144_v12  ;;  %530 = vst.msk [vmem:[#allocation2 + $0x50] sm:$0xff] (!%p241_p9), %vm518_vm0, %v1144_v12  ;;  %v1327_v36 = vsub.s32 (!%p241_p9), 0, %v1315_v30  ;;  %v1338_v41 = vsub.s32 (!%p241_p9), 3, %v1315_v30 }
  0x14   : > { %529 = vst.msk [vmem:[#allocation2 + $0x48] sm:$0xf] (!%p241_p9), %vm520_vm1, %v1144_v12  ;;  %531 = vst.msk [vmem:[#allocation2 + $0x58] sm:$0xf] (!%p241_p9), %vm520_vm1, %v1144_v12  ;;  %v1330_v37 = vrot.slane (!%p241_p9), %v285_v35, %v1318_v31  ;;  %v1335_v40 = vrot.slane (!%p241_p9), %v285_v35, %v1321_v34 }
  0x15   : > { %s273_s13 = scalar_select %p272_p10, %s1209_s28, 1  ;;  %532 = vst.msk [vmem:[#allocation2 + $0x60] sm:$0xff] %vm518_vm0, %v1144_v12  ;;  %534 = vst.msk [vmem:[#allocation2 + $0x70] sm:$0xff] %vm518_vm0, %v1144_v12  ;;  %v1341_v42 = vrot.slane %v285_v35, %v1327_v36  ;;  %v1349_v48 = vrot.slane %v285_v35, %v1338_v41 }
  0x16   : > { %533 = vst.msk [vmem:[#allocation2 + $0x68] sm:$0xf] %vm520_vm1, %v1144_v12  ;;  %535 = vst.msk [vmem:[#allocation2 + $0x78] sm:$0xf] %vm520_vm1, %v1144_v12 }
  0x17   : > { %s1019_s14 = sshll.u32 %s273_s13, 6  ;;  %700 = vst.msk [vmem:[#allocation3] sm:$0xff] %vm518_vm0, %v1144_v12  ;;  %701 = vst.msk [vmem:[#allocation3 + $0x8] sm:$0xff] %vm518_vm0, %v1144_v12  ;;  %s1080_s13 = sshll.u32 %s1146_s9, 4  ;;  %s1081_s13 = int_to_ptr.vmem [resolvable:$false] %s1080_s13 }
  0x18   : > { %s276_s17 = scalar_lea.vmem %s1653_s0, %s1019_s14  ;;  %702 = vst.msk [vmem:[#allocation3 + $0x10] sm:$0xff] %vm518_vm0, %v1144_v12  ;;  %703 = vst.msk [vmem:[#allocation3 + $0x18] sm:$0xff] %vm518_vm0, %v1144_v12  ;;  %s1082_s14 = scalar_lea.vmem %s1081_s13, 2048 }
  0x19   : > { %v1241_v1 = vld [vmem:[%s276_s17 + $0x10] sm:$0xff]  ;;  %v277_v2 = vld [vmem:[%s276_s17] sm:$0xff]  ;;  %v1244_v3 = vld [vmem:[%s276_s17 + $0x18] sm:$0xff]  ;;  %704 = vst.msk [vmem:[#allocation3 + $0x20] sm:$0xff] %vm518_vm0, %v1144_v12 }
  0x1a   : > { %299 = vperm.xlu1 %1068, %v1241_v1   ;;  %289 = vperm.xlu0 %1067, %v277_v2   ;;  %v1246_v4 = vld [vmem:[%s276_s17 + $0x8] sm:$0xff]  ;;  %v1252_v6 = vld [vmem:[%s276_s17 + $0x20] sm:$0xff]  ;;  %v1256_v7 = vld [vmem:[%s276_s17 + $0x30] sm:$0xff]  ;;  %705 = vst.msk [vmem:[#allocation3 + $0x28] sm:$0xff] %vm518_vm0, %v1144_v12 }
  0x1b   : > { %v1250_v5 = vld [vmem:[%s276_s17 + $0x28] sm:$0xff]  ;;  %v284_v9 = vld [vmem:[%s276_s17 + $0x38] sm:$0xff]  ;;  %706 = vst.msk [vmem:[#allocation3 + $0x30] sm:$0xff] %vm518_vm0, %v1144_v12  ;;  %707 = vst.msk [vmem:[#allocation3 + $0x38] sm:$0xff] %vm518_vm0, %v1144_v12  ;;  %s269_s17 = sand.u32 1, %s1130_s25  }
  0x1c   : > { %708 = vst.msk [vmem:[#allocation3 + $0x40] sm:$0xff] %vm518_vm0, %v1144_v12  ;;  %709 = vst.msk [vmem:[#allocation3 + $0x48] sm:$0xff] %vm518_vm0, %v1144_v12  ;;  %s1008_s18 = sshll.u32 %s269_s17, 6  ;;  %s1611_s28 = scalar_lea.sflag [#allocation5], %s269_s17 }
  0x1d   : > { %710 = vst.msk [vmem:[#allocation3 + $0x50] sm:$0xff] %vm518_vm0, %v1144_v12  ;;  %711 = vst.msk [vmem:[#allocation3 + $0x58] sm:$0xff] %vm518_vm0, %v1144_v12  ;;  %s271_s19 = scalar_lea.vmem [#allocation4], %s1008_s18 }
  0x1e   : > { %304 = vperm.xlu1 %1068, %v1244_v3   ;;  %294 = vperm.xlu0 %1067, %v1246_v4   ;;  %s942_s21 = sshll.u32 %s271_s19, 4  ;;  %s1605_s21 = int_to_ptr.vmem [resolvable:$true] %s942_s21 }
  0x1f   : > { %s1076_s8 = scalar_lea.vmem %s1605_s21, 1024  ;;  %p1083_p0 = scmp.lt.s32.totalorder %s1605_s21, %s1081_s13 }
  0x20   : > { %p1077_p11 = scmp.ne.s32.totalorder %s1605_s21, %s1076_s8  ;;  %p1084_p1 = scmp.lt.s32.totalorder %s1082_s14, %s1076_s8 }
  0x22   : > { %314 = vperm.xlu1 %1068, %v1250_v5   ;;  %309 = vperm.xlu0 %1067, %v1252_v6   ;;  %p1078_p12 = pnand %p1077_p11, %p1226_p5  ;;  %p1085_p2 = por %p1084_p1, %p1083_p0 }
  0x24   : > { %p1079_p13 = pneg %p1078_p12 }
  0x26   : > { %1069 = vset.pattern.permute.xlu1 %v1141_v8  ;;  %319 = vperm.xlu0 %1067, %v1256_v7   ;;  %p1086_p3 = pnand %p1085_p2, %p1079_p13 }
  0x27   : > { %348 = vperm.xlu1 %1069, %v277_v2  }
  0x2a   : > { %1070 = vset.pattern.permute.xlu0 %v1141_v8 }
  0x2b   : > { %356 = vperm.xlu1 %1069, %v1241_v1   ;;  %352 = vperm.xlu0 %1070, %v1246_v4  }
  0x2f   : > { %360 = vperm.xlu1 %1069, %v1244_v3   ;;  %364 = vperm.xlu0 %1070, %v1252_v6  }
  0x33   : > { %368 = vperm.xlu1 %1069, %v1250_v5   ;;  %372 = vperm.xlu0 %1070, %v1256_v7  }
  0x37   : > { %1071 = vset.pattern.permute.xlu1 %v1140_v0  ;;  %376 = vperm.xlu0 %1070, %v284_v9  }
  0x38   : > { %324 = vperm.xlu1 %1071, %v284_v9  }
  0x3b   : > { %1073 = vset.pattern.permute.xlu0 %v1142_v10 }
  0x3c   : > { %1072 = vset.pattern.permute.xlu1 %v1142_v10  ;;  %404 = vperm.xlu0 %1073, %v1246_v4  }
  0x3d   : > { %400 = vperm.xlu1 %1072, %v277_v2  }
  0x40   : > { %416 = vperm.xlu0 %1073, %v1252_v6  }
  0x41   : > { %408 = vperm.xlu1 %1072, %v1241_v1  }
  0x44   : > { %424 = vperm.xlu0 %1073, %v1256_v7  }
  0x45   : > { %412 = vperm.xlu1 %1072, %v1244_v3  }
  0x48   : > { %1074 = vset.pattern.permute.xlu0 %v1143_v11 }
  0x49   : > { %420 = vperm.xlu1 %1072, %v1250_v5   ;;  %452 = vperm.xlu0 %1074, %v277_v2  }
  0x4d   : > { %428 = vperm.xlu1 %1072, %v284_v9   ;;  %464 = vperm.xlu0 %1074, %v1244_v3  }
  0x51   : > { %1075 = vset.pattern.permute.xlu1 %v1143_v11  ;;  %472 = vperm.xlu0 %1074, %v1250_v5  }
  0x52   : > { %456 = vperm.xlu1 %1075, %v1246_v4  }
  0x55   : > { %480 = vperm.xlu0 %1074, %v284_v9  }
  0x56   : > { %460 = vperm.xlu1 %1075, %v1241_v1   ;;  %v517_v1 = vld [vmem:[%s1656_s3] sm:$0x1f] }
  0x57   : > { %v1375_v12 = vrot.slane %v517_v1, %v1327_v36  ;;  %v1389_v35 = vrot.slane %v517_v1, %v1321_v34 }
  0x5a   : > { %468 = vperm.xlu1 %1075, %v1252_v6  }
  0x5e   : > { %476 = vperm.xlu1 %1075, %v1256_v7  }
  0x99   : > { %v1305_v13 = vpop.permute.xlu1 %299  ;;  %v290_v14 = vpop.permute.xlu0 %289 }
  0x9a   : > { %v331_v46 = vmul.f32 %v1341_v42, %v290_v14  ;;  %v333_v27 = vmul.f32 %v1341_v42, %v1305_v13 }
  0x9d   : > { %v305_v15 = vpop.permute.xlu1 %304  ;;  %v295_v16 = vpop.permute.xlu0 %294 }
  0x9e   : > { %v334_v53 = vmul.f32 %v1341_v42, %v305_v15  ;;  %v332_v6 = vmul.f32 %v1341_v42, %v295_v16 }
  0xa1   : > { %v315_v17 = vpop.permute.xlu1 %314  ;;  %v1307_v18 = vpop.permute.xlu0 %309 }
  0xa2   : > { %v336_v61 = vmul.f32 %v1341_v42, %v315_v17 }
  0xa5   : > { %v1309_v19 = vpop.permute.xlu0 %319 }
  0xa6   : > { %v349_v20 = vpop.permute.xlu1 %348 }
  0xa7   : > { %v383_v43 = vmul.f32 %v1330_v37, %v349_v20 }
  0xa9   : > { %v391_v49 = vadd.f32 %v383_v43, %v331_v46 }
  0xaa   : > { %v357_v21 = vpop.permute.xlu1 %356  ;;  %v353_v22 = vpop.permute.xlu0 %352 }
  0xab   : > { %v384_v62 = vmul.f32 %v1330_v37, %v353_v22  ;;  %v385_v14 = vmul.f32 %v1330_v37, %v357_v21  ;;  %v1386_v21 = vrot.slane %v517_v1, %v1318_v31 }
  0xad   : > { %v392_v15 = vadd.f32 %v384_v62, %v332_v6  ;;  %v337_v6 = vmul.f32 %v1341_v42, %v1309_v19 }
  0xae   : > { %v361_v23 = vpop.permute.xlu1 %360  ;;  %v1311_v24 = vpop.permute.xlu0 %364 }
  0xaf   : > { %v386_v50 = vmul.f32 %v1330_v37, %v361_v23  ;;  %v387_v46 = vmul.f32 %v1330_v37, %v1311_v24 }
  0xb1   : > { %v394_v58 = vadd.f32 %v386_v50, %v334_v53 }
  0xb2   : > { %v369_v25 = vpop.permute.xlu1 %368  ;;  %v1313_v26 = vpop.permute.xlu0 %372 }
  0xb3   : > { %v388_v59 = vmul.f32 %v1330_v37, %v369_v25 }
  0xb5   : > { %v396_v8 = vadd.f32 %v388_v59, %v336_v61  ;;  %v1404_v61 = vrot.slane %v517_v1, %v1338_v41 }
  0xb6   : > { %v377_v28 = vpop.permute.xlu0 %376 }
  0xb7   : > { %v325_v29 = vpop.permute.xlu1 %324  ;;  %v390_v9 = vmul.f32 %v1330_v37, %v377_v28 }
  0xb8   : > { %v338_v10 = vmul.f32 %v1341_v42, %v325_v29 }
  0xbb   : > { %v405_v32 = vpop.permute.xlu0 %404 }
  0xbc   : > { %v401_v33 = vpop.permute.xlu1 %400  ;;  %v436_v7 = vmul.f32 %v1335_v40, %v405_v32 }
  0xbd   : > { %v435_v47 = vmul.f32 %v1335_v40, %v401_v33  ;;  %v398_v33 = vadd.f32 %v390_v9, %v338_v10 }
  0xbe   : > { %v444_v28 = vadd.f32 %v436_v7, %v392_v15 }
  0xbf   : > { %v1332_v38 = vpop.permute.xlu0 %416  ;;  %v443_v54 = vadd.f32 %v435_v47, %v391_v49  ;;  %v335_v49 = vmul.f32 %v1341_v42, %v1307_v18 }
  0xc0   : > { %v409_v39 = vpop.permute.xlu1 %408 }
  0xc1   : > { %v437_v29 = vmul.f32 %v1335_v40, %v409_v39  ;;  %v666_v39 = vsub.s32 4, %v1315_v30 }
  0xc3   : > { %v1344_v44 = vpop.permute.xlu0 %424 }
  0xc4   : > { %v413_v45 = vpop.permute.xlu1 %412  ;;  %v441_v10 = vmul.f32 %v1335_v40, %v1344_v44 }
  0xc5   : > { %v438_v55 = vmul.f32 %v1335_v40, %v413_v45  ;;  %v393_v45 = vadd.f32 %v385_v14, %v333_v27 }
  0xc7   : > { %v446_v2 = vadd.f32 %v438_v55, %v394_v58  ;;  %v445_v55 = vadd.f32 %v437_v29, %v393_v45 }
  0xc8   : > { %v421_v51 = vpop.permute.xlu1 %420  ;;  %v453_v52 = vpop.permute.xlu0 %452 }
  0xc9   : > { %v487_v56 = vmul.f32 %v1349_v48, %v453_v52  ;;  %v440_v3 = vmul.f32 %v1335_v40, %v421_v51 }
  0xcb   : > { %v495_v60 = vadd.f32 %v487_v56, %v443_v54  ;;  %v448_v20 = vadd.f32 %v440_v3, %v396_v8  ;;  %v439_v54 = vmul.f32 %v1335_v40, %v1332_v38  ;;  %v389_v38 = vmul.f32 %v1330_v37, %v1313_v26 }
  0xcc   : > { %v429_v63 = vpop.permute.xlu1 %428  ;;  %v465_v0 = vpop.permute.xlu0 %464 }
  0xcd   : > { %v509_v4 = vadd.f32 %v1358_v57, %v495_v60  ;;  %v490_v5 = vmul.f32 %v1349_v48, %v465_v0  ;;  %v442_v16 = vmul.f32 %v1335_v40, %v429_v63  ;;  %v395_v0 = vadd.f32 %v387_v46, %v335_v49 }
  0xcf   : > { %536 = vst.msk [vmem:[#allocation2 + $0x2] sm:$0xff] %vm518_vm0, %v509_v4  ;;  %v498_v11 = vadd.f32 %v490_v5, %v446_v2  ;;  %v450_v50 = vadd.f32 %v442_v16, %v398_v33  ;;  %v1414_v4 = vrot.slane %v517_v1, %v666_v39  ;;  %v1419_v5 = vld [vmem:[%s1658_s5] sm:$0x1f]  ;;  %v447_v9 = vadd.f32 %v439_v54, %v395_v0 }
  0xd0   : > { %v473_v17 = vpop.permute.xlu0 %472  ;;  %v1436_v44 = vrot.slane %v1419_v5, %v1327_v36 }
  0xd1   : > { %v512_v22 = vadd.f32 %v1358_v57, %v498_v11  ;;  %v492_v23 = vmul.f32 %v1349_v48, %v473_v17  ;;  %v457_v25 = vpop.permute.xlu1 %456 }
  0xd2   : > { %v488_v32 = vmul.f32 %v1349_v48, %v457_v25 }
  0xd3   : > { %539 = vst.msk [vmem:[#allocation2 + $0x32] sm:$0xff] %vm518_vm0, %v512_v22  ;;  %v500_v43 = vadd.f32 %v492_v23, %v448_v20  ;;  %v397_v23 = vadd.f32 %v389_v38, %v337_v6 }
  0xd4   : > { %v496_v13 = vadd.f32 %v488_v32, %v444_v28  ;;  %v481_v47 = vpop.permute.xlu0 %480 }
  0xd5   : > { %v514_v51 = vadd.f32 %v1358_v57, %v500_v43  ;;  %v494_v52 = vmul.f32 %v1349_v48, %v481_v47  ;;  %v461_v53 = vpop.permute.xlu1 %460  ;;  %v449_v33 = vadd.f32 %v441_v10, %v397_v23 }
  0xd6   : > { %v544_v56 = vld [vmem:[#allocation2] sm:$0xff]  ;;  %v510_v59 = vadd.f32 %v1358_v57, %v496_v13  ;;  %v489_v60 = vmul.f32 %v1349_v48, %v461_v53 }
  0xd7   : > { %v572_v58 = vld [vmem:[#allocation2 + $0x1] sm:$0xff]  ;;  %v556_v18 = vmul.f32 %v1375_v12, %v544_v56  ;;  %541 = vst.msk [vmem:[#allocation2 + $0x52] sm:$0xff] %vm518_vm0, %v514_v51  ;;  %v502_v63 = vadd.f32 %v494_v52, %v450_v50  ;;  %v1452_v56 = vrot.slane %v1419_v5, %v1318_v31 }
  0xd8   : > { %v600_v24 = vld [vmem:[#allocation2 + $0x2] sm:$0xff]  ;;  %v584_v62 = vmul.f32 %v1386_v21, %v572_v58  ;;  %537 = vst.msk [vmem:[#allocation2 + $0x12] sm:$0xff] %vm518_vm0, %v510_v59  ;;  %v497_v3 = vadd.f32 %v489_v60, %v445_v55  ;;  %v1448_v55 = vld [vmem:[%s1657_s4] ss:$0 sm:$0xff] }
  0xd9   : > { %v628_v2 = vld [vmem:[#allocation2 + $0x3] sm:$0xff]  ;;  %v612_v8 = vmul.f32 %v1389_v35, %v600_v24  ;;  %v516_v26 = vadd.f32 %v1358_v57, %v502_v63  ;;  %v469_v37 = vpop.permute.xlu1 %468 }
  0xda   : > { %v592_v7 = vadd.f32 %v584_v62, %v556_v18  ;;  %v547_v1 = vld [vmem:[#allocation2 + $0x30] sm:$0xff]  ;;  %v511_v15 = vadd.f32 %v1358_v57, %v497_v3  ;;  %v491_v17 = vmul.f32 %v1349_v48, %v469_v37  ;;  %v640_v19 = vmul.f32 %v1404_v61, %v628_v2  ;;  %v656_v42 = vld [vmem:[#allocation2 + $0x4] sm:$0xff] }
  0xdb   : > { %v575_v11 = vld [vmem:[#allocation2 + $0x31] sm:$0xff]  ;;  %v559_v16 = vmul.f32 %v1375_v12, %v547_v1  ;;  %543 = vst.msk [vmem:[#allocation2 + $0x72] sm:$0xff] %vm518_vm0, %v516_v26  ;;  %v668_v49 = vmul.f32 %v1414_v4, %v656_v42 }
  0xdc   : > { %v603_v14 = vld [vmem:[#allocation2 + $0x32] sm:$0xff]  ;;  %v620_v20 = vadd.f32 %v612_v8, %v592_v7  ;;  %v587_v22 = vmul.f32 %v1386_v21, %v575_v11  ;;  %538 = vst.msk [vmem:[#allocation2 + $0x22] sm:$0xff] %vm518_vm0, %v511_v15  ;;  %v499_v40 = vadd.f32 %v491_v17, %v447_v9 }
  0xdd   : > { %v631_v25 = vld [vmem:[#allocation2 + $0x33] sm:$0xff]  ;;  %v615_v29 = vmul.f32 %v1389_v35, %v603_v14  ;;  %v477_v32 = vpop.permute.xlu1 %476 }
  0xde   : > { %v648_v27 = vadd.f32 %v640_v19, %v620_v20  ;;  %v595_v28 = vadd.f32 %v587_v22, %v559_v16  ;;  %v549_v43 = vld [vmem:[#allocation2 + $0x50] sm:$0xff]  ;;  %v513_v13 = vadd.f32 %v1358_v57, %v499_v40  ;;  %v493_v47 = vmul.f32 %v1349_v48, %v477_v32 }
  0xdf   : > { %v577_v45 = vld [vmem:[#allocation2 + $0x51] sm:$0xff]  ;;  %v643_v51 = vmul.f32 %v1404_v61, %v631_v25  ;;  %v561_v52 = vmul.f32 %v1375_v12, %v549_v43 }
  0xe0   : > { %v605_v46 = vld [vmem:[#allocation2 + $0x52] sm:$0xff]  ;;  %v623_v50 = vadd.f32 %v615_v29, %v595_v28  ;;  %v589_v53 = vmul.f32 %v1386_v21, %v577_v45  ;;  %540 = vst.msk [vmem:[#allocation2 + $0x42] sm:$0xff] %vm518_vm0, %v513_v13  ;;  %v501_v59 = vadd.f32 %v493_v47, %v449_v33  ;;  %v676_v60 = vadd.f32 %v668_v49, %v648_v27  ;;  %v721_v29 = vld [vmem:[#allocation3] sm:$0xff] }
  0xe1   : > { %v659_v36 = vld [vmem:[#allocation2 + $0x34] sm:$0xff]  ;;  %v617_v63 = vmul.f32 %v1389_v35, %v605_v46  ;;  %v750_v46 = vld [vmem:[#allocation3 + $0x8] sm:$0xff] }
  0xe2   : > { %v545_v54 = vld [vmem:[#allocation2 + $0x10] sm:$0xff]  ;;  %v651_v18 = vadd.f32 %v643_v51, %v623_v50  ;;  %v597_v62 = vadd.f32 %v589_v53, %v561_v52  ;;  %v515_v8 = vadd.f32 %v1358_v57, %v501_v59  ;;  %v691_v26 = vadd.f32 %v1448_v55, %v676_v60 }
  0xe3   : > { %v557_v48 = vmul.f32 %v1375_v12, %v545_v54  ;;  %v573_v58 = vld [vmem:[#allocation2 + $0x11] sm:$0xff]  ;;  %v671_v37 = vmul.f32 %v1414_v4, %v659_v36  ;;  %v546_v17 = vld [vmem:[#allocation2 + $0x20] sm:$0xff]  ;;  %v733_v59 = vmul.f32 %v1436_v44, %v721_v29 }
  0xe4   : > { %v601_v24 = vld [vmem:[#allocation2 + $0x12] sm:$0xff]  ;;  %v585_v38 = vmul.f32 %v1386_v21, %v573_v58  ;;  %v625_v9 = vadd.f32 %v617_v63, %v597_v62  ;;  %v558_v42 = vmul.f32 %v1375_v12, %v546_v17  ;;  %v574_v57 = vld [vmem:[#allocation2 + $0x21] sm:$0xff]  ;;  %542 = vst.msk [vmem:[#allocation2 + $0x62] sm:$0xff] %vm518_vm0, %v515_v8  ;;  %713 = vst.msk [vmem:[#allocation3 + $0x10] sm:$0xff] %vm518_vm0, %v691_v26 }
  0xe5   : > { %v633_v0 = vld [vmem:[#allocation2 + $0x53] sm:$0xff]  ;;  %v613_v3 = vmul.f32 %v1389_v35, %v601_v24  ;;  %v602_v16 = vld [vmem:[#allocation2 + $0x22] sm:$0xff]  ;;  %v679_v22 = vadd.f32 %v671_v37, %v651_v18  ;;  %v586_v28 = vmul.f32 %v1386_v21, %v574_v57 }
  0xe6   : > { %v629_v2 = vld [vmem:[#allocation2 + $0x13] sm:$0xff]  ;;  %v593_v10 = vadd.f32 %v585_v38, %v557_v48  ;;  %v645_v20 = vmul.f32 %v1404_v61, %v633_v0  ;;  %v630_v43 = vld [vmem:[#allocation2 + $0x23] sm:$0xff]  ;;  %v614_v51 = vmul.f32 %v1389_v35, %v602_v16 }
  0xe7   : > { %v551_v31 = vld [vmem:[#allocation2 + $0x70] sm:$0xff]  ;;  %v641_v19 = vmul.f32 %v1404_v61, %v629_v2  ;;  %v694_v13 = vadd.f32 %v1448_v55, %v679_v22  ;;  %v594_v50 = vadd.f32 %v586_v28, %v558_v42  ;;  %v548_v36 = vld [vmem:[#allocation2 + $0x40] sm:$0xff]  ;;  %v642_v63 = vmul.f32 %v1404_v61, %v630_v43 }
  0xe8   : > { %v579_v6 = vld [vmem:[#allocation2 + $0x71] sm:$0xff]  ;;  %v563_v11 = vmul.f32 %v1375_v12, %v551_v31  ;;  %v621_v25 = vadd.f32 %v613_v3, %v593_v10  ;;  %v653_v32 = vadd.f32 %v645_v20, %v625_v9  ;;  %v576_v52 = vld [vmem:[#allocation2 + $0x41] sm:$0xff]  ;;  %v560_v58 = vmul.f32 %v1375_v12, %v548_v36 }
  0xe9   : > { %v607_v7 = vld [vmem:[#allocation2 + $0x72] sm:$0xff]  ;;  %v591_v14 = vmul.f32 %v1386_v21, %v579_v6  ;;  %v604_v53 = vld [vmem:[#allocation2 + $0x42] sm:$0xff]  ;;  %v588_v24 = vmul.f32 %v1386_v21, %v576_v52  ;;  %716 = vst.msk [vmem:[#allocation3 + $0x28] sm:$0xff] %vm518_vm0, %v694_v13  ;;  %v622_v62 = vadd.f32 %v614_v51, %v594_v50  ;;  %v762_v6 = vmul.f32 %v1452_v56, %v750_v46 }
  0xea   : > { %v657_v1 = vld [vmem:[#allocation2 + $0x14] sm:$0xff]  ;;  %v619_v27 = vmul.f32 %v1389_v35, %v607_v7  ;;  %v649_v47 = vadd.f32 %v641_v19, %v621_v25  ;;  %v658_v48 = vld [vmem:[#allocation2 + $0x24] sm:$0xff]  ;;  %v616_v3 = vmul.f32 %v1389_v35, %v604_v53  ;;  %v1491_v19 = vrot.slane %v1419_v5, %v1321_v34 }
  0xeb   : > { %v635_v15 = vld [vmem:[#allocation2 + $0x73] sm:$0xff]  ;;  %v599_v40 = vadd.f32 %v591_v14, %v563_v11  ;;  %v669_v45 = vmul.f32 %v1414_v4, %v657_v1  ;;  %v632_v0 = vld [vmem:[#allocation2 + $0x43] sm:$0xff]  ;;  %v596_v2 = vadd.f32 %v588_v24, %v560_v58  ;;  %v650_v8 = vadd.f32 %v642_v63, %v622_v62 }
  0xec   : > { %v661_v23 = vld [vmem:[#allocation2 + $0x54] sm:$0xff]  ;;  %v647_v33 = vmul.f32 %v1404_v61, %v635_v15  ;;  %v660_v31 = vld [vmem:[#allocation2 + $0x44] sm:$0xff]  ;;  %v670_v10 = vmul.f32 %v1414_v4, %v658_v48  ;;  %v644_v15 = vmul.f32 %v1404_v61, %v632_v0  ;;  %v1514_v36 = vrot.slane %v1419_v5, %v1338_v41 }
  0xed   : > { %v627_v49 = vadd.f32 %v619_v27, %v599_v40  ;;  %v663_v54 = vld [vmem:[#allocation2 + $0x74] sm:$0xff]  ;;  %v673_v60 = vmul.f32 %v1414_v4, %v661_v23  ;;  %v677_v38 = vadd.f32 %v669_v45, %v649_v47  ;;  %v550_v26 = vld [vmem:[#allocation2 + $0x60] sm:$0xff]  ;;  %v624_v14 = vadd.f32 %v616_v3, %v596_v2 }
  0xee   : > { %v578_v37 = vld [vmem:[#allocation2 + $0x61] sm:$0xff]  ;;  %v675_v11 = vmul.f32 %v1414_v4, %v663_v54  ;;  %v562_v17 = vmul.f32 %v1375_v12, %v550_v26  ;;  %v678_v57 = vadd.f32 %v670_v10, %v650_v8  ;;  %v672_v16 = vmul.f32 %v1414_v4, %v660_v31  ;;  %v778_v27 = vld [vmem:[#allocation3 + $0x10] sm:$0xff]  ;;  %v1542_v26 = vld [vmem:[%s1659_s6] ss:$0 sm:$0xff] }
  0xef   : > { %v655_v18 = vadd.f32 %v647_v33, %v627_v49  ;;  %v681_v7 = vadd.f32 %v673_v60, %v653_v32  ;;  %v606_v9 = vld [vmem:[#allocation2 + $0x62] sm:$0xff]  ;;  %v692_v1 = vadd.f32 %v1448_v55, %v677_v38  ;;  %v590_v20 = vmul.f32 %v1386_v21, %v578_v37  ;;  %v842_v47 = vld [vmem:[#allocation3 + $0x50] sm:$0xff] }
  0xf0   : > { %v634_v42 = vld [vmem:[#allocation2 + $0x63] sm:$0xff]  ;;  %v652_v23 = vadd.f32 %v644_v15, %v624_v14  ;;  %v618_v40 = vmul.f32 %v1389_v35, %v606_v9  ;;  %v693_v21 = vadd.f32 %v1448_v55, %v678_v57  ;;  %v770_v32 = vadd.f32 %v762_v6, %v733_v59 }
  0xf1   : > { %714 = vst.msk [vmem:[#allocation3 + $0x18] sm:$0xff] %vm518_vm0, %v692_v1  ;;  %v683_v22 = vadd.f32 %v675_v11, %v655_v18  ;;  %v598_v25 = vadd.f32 %v590_v20, %v562_v17  ;;  %v696_v12 = vadd.f32 %v1448_v55, %v681_v7  ;;  %v662_v28 = vld [vmem:[#allocation2 + $0x64] sm:$0xff]  ;;  %v646_v34 = vmul.f32 %v1404_v61, %v634_v42 }
  0xf2   : > { %v680_v33 = vadd.f32 %v672_v16, %v652_v23  ;;  %715 = vst.msk [vmem:[#allocation3 + $0x20] sm:$0xff] %vm518_vm0, %v693_v21  ;;  %v790_v43 = vmul.f32 %v1491_v19, %v778_v27  ;;  %v1505_v35 = vrot.slane %v1419_v5, %v666_v39  ;;  %v734_v45 = vmul.f32 %v750_v46, %v1436_v44  ;;  %v837_v39 = vld [vmem:[#allocation3 + $0x28] sm:$0xff] }
  0xf3   : > { %v626_v29 = vadd.f32 %v618_v40, %v598_v25  ;;  %718 = vst.msk [vmem:[#allocation3 + $0x38] sm:$0xff] %vm518_vm0, %v696_v12  ;;  %v698_v13 = vadd.f32 %v1448_v55, %v683_v22  ;;  %v763_v61 = vmul.f32 %v778_v27, %v1452_v56  ;;  %v674_v51 = vmul.f32 %v1414_v4, %v662_v28 }
  0xf4   : > { %v695_v50 = vadd.f32 %v1448_v55, %v680_v33  ;;  %v1519_v52 = vmul.f32 %v1505_v35, %v842_v47  ;;  %v1525_v48 = vmul.f32 %v842_v47, %v1514_v36  ;;  %v798_v41 = vadd.f32 %v790_v43, %v770_v32 }
  0xf5   : > { %v654_v49 = vadd.f32 %v646_v34, %v626_v29  ;;  %720 = vst.msk [vmem:[#allocation3 + $0x48] sm:$0xff] %vm518_vm0, %v698_v13  ;;  %v771_v5 = vadd.f32 %v763_v61, %v734_v45  ;;  %v735_v58 = vmul.f32 %v778_v27, %v1436_v44  ;;  %v849_v59 = vmul.f32 %v1505_v35, %v837_v39 }
  0xf6   : > { %717 = vst.msk [vmem:[#allocation3 + $0x30] sm:$0xff] %vm518_vm0, %v695_v50  ;;  %v821_v60 = vmul.f32 %v837_v39, %v1514_v36  ;;  %v793_v18 = vmul.f32 %v837_v39, %v1491_v19  ;;  %v766_v63 = vmul.f32 %v837_v39, %v1452_v56  ;;  %v738_v1 = vmul.f32 %v837_v39, %v1436_v44 }
  0xf7   : > { %v682_v46 = vadd.f32 %v674_v51, %v654_v49 }
  0xf8   : > { %v807_v30 = vld [vmem:[#allocation3 + $0x18] sm:$0xff] }
  0xf9   : > { %v819_v53 = vmul.f32 %v1514_v36, %v807_v30  ;;  %v791_v54 = vmul.f32 %v807_v30, %v1491_v19  ;;  %v764_v4 = vmul.f32 %v807_v30, %v1452_v56  ;;  %v697_v24 = vadd.f32 %v1448_v55, %v682_v46  ;;  %v836_v38 = vld [vmem:[#allocation3 + $0x20] sm:$0xff] }
  0xfa   : > { %v839_v62 = vld [vmem:[#allocation3 + $0x38] sm:$0xff]  ;;  %v736_v31 = vmul.f32 %v807_v30, %v1436_v44  ;;  %v848_v6 = vmul.f32 %v1505_v35, %v836_v38  ;;  %v820_v55 = vmul.f32 %v836_v38, %v1514_v36  ;;  %v792_v7 = vmul.f32 %v836_v38, %v1491_v19 }
  0xfb   : > { %v827_v0 = vadd.f32 %v819_v53, %v798_v41  ;;  %v799_v2 = vadd.f32 %v791_v54, %v771_v5  ;;  %v772_v3 = vadd.f32 %v764_v4, %v735_v58  ;;  %719 = vst.msk [vmem:[#allocation3 + $0x40] sm:$0xff] %vm518_vm0, %v697_v24  ;;  %v765_v8 = vmul.f32 %v836_v38, %v1452_v56 }
  0xfc   : > { %v851_v37 = vmul.f32 %v1505_v35, %v839_v62  ;;  %v737_v9 = vmul.f32 %v836_v38, %v1436_v44  ;;  %v823_v10 = vmul.f32 %v839_v62, %v1514_v36  ;;  %v795_v21 = vmul.f32 %v839_v62, %v1491_v19  ;;  %v841_v50 = vld [vmem:[#allocation3 + $0x48] sm:$0xff] }
  0xfd   : > { %v856_v11 = vadd.f32 %v848_v6, %v827_v0  ;;  %v828_v14 = vadd.f32 %v820_v55, %v799_v2  ;;  %v800_v15 = vadd.f32 %v792_v7, %v772_v3  ;;  %v838_v17 = vld [vmem:[#allocation3 + $0x30] sm:$0xff]  ;;  %v773_v20 = vadd.f32 %v765_v8, %v736_v31 }
  0xfe   : > { %v850_v42 = vmul.f32 %v1505_v35, %v838_v17  ;;  %v822_v57 = vmul.f32 %v838_v17, %v1514_v36  ;;  %v774_v16 = vadd.f32 %v766_v63, %v737_v9  ;;  %v794_v22 = vmul.f32 %v838_v17, %v1491_v19 }
  0xff   : > { %v871_v23 = vadd.f32 %v1542_v26, %v856_v11  ;;  %v857_v25 = vadd.f32 %v849_v59, %v828_v14  ;;  %v829_v40 = vadd.f32 %v821_v60, %v800_v15  ;;  %v801_v27 = vadd.f32 %v793_v18, %v773_v20  ;;  %v843_v60 = vld [vmem:[#allocation3 + $0x58] sm:$0xff] }
 0x100   : > { %v802_v12 = vadd.f32 %v794_v22, %v774_v16  ;;  %v767_v28 = vmul.f32 %v838_v17, %v1452_v56  ;;  %v739_v29 = vmul.f32 %v838_v17, %v1436_v44  ;;  %v768_v45 = vmul.f32 %v839_v62, %v1452_v56 }
 0x101   : > { %887 = vrot.lane.b32.xlu1 %v871_v23, %s1145_s16  ;;  %v872_v34 = vadd.f32 %v1542_v26, %v857_v25  ;;  %v858_v32 = vadd.f32 %v850_v42, %v829_v40  ;;  %v830_v33 = vadd.f32 %v822_v57, %v801_v27  ;;  %v740_v4 = vmul.f32 %v839_v62, %v1436_v44 }
 0x102   : > { %v840_v43 = vld [vmem:[#allocation3 + $0x40] sm:$0xff]  ;;  %v831_v13 = vadd.f32 %v823_v10, %v802_v12  ;;  %v775_v49 = vadd.f32 %v767_v28, %v738_v1  ;;  %v776_v39 = vadd.f32 %v768_v45, %v739_v29  ;;  %v853_v58 = vmul.f32 %v1505_v35, %v841_v50 }
 0x103   : > { %v852_v47 = vmul.f32 %v1505_v35, %v840_v43  ;;  %v824_v61 = vmul.f32 %v840_v43, %v1514_v36  ;;  %889 = vrot.lane.b32.xlu0 %v872_v34, %s1145_s16  ;;  %v873_v51 = vadd.f32 %v1542_v26, %v858_v32  ;;  %v859_v30 = vadd.f32 %v851_v37, %v830_v33 }
 0x104   : > { %v796_v46 = vmul.f32 %v840_v43, %v1491_v19  ;;  %v803_v54 = vadd.f32 %v795_v21, %v775_v49  ;;  %v769_v41 = vmul.f32 %v840_v43, %v1452_v56  ;;  %v825_v59 = vmul.f32 %v841_v50, %v1514_v36 }
 0x105   : > { %v860_v53 = vadd.f32 %v852_v47, %v831_v13  ;;  %891 = vrot.lane.b32.xlu1 %v873_v51, %s1145_s16  ;;  %v874_v5 = vadd.f32 %v1542_v26, %v859_v30  ;;  %v797_v38 = vmul.f32 %v841_v50, %v1491_v19  ;;  %v855_v2 = vmul.f32 %v1505_v35, %v843_v60 }
 0x106   : > { %v804_v24 = vadd.f32 %v796_v46, %v776_v39  ;;  %v832_v63 = vadd.f32 %v824_v61, %v803_v54  ;;  %v777_v0 = vadd.f32 %v769_v41, %v740_v4 }
 0x107   : > { %v875_v18 = vadd.f32 %v1542_v26, %v860_v53  ;;  %893 = vrot.lane.b32.xlu0 %v874_v5, %s1145_s16 }
 0x108   : > { %v833_v44 = vadd.f32 %v825_v59, %v804_v24  ;;  %v861_v56 = vadd.f32 %v853_v58, %v832_v63  ;;  %v805_v62 = vadd.f32 %v797_v38, %v777_v0 }
 0x109   : > { %895 = vrot.lane.b32.xlu1 %v875_v18, %s1145_s16 }
 0x10a   : > { %v862_v36 = vadd.f32 %v1519_v52, %v833_v44  ;;  %v876_v3 = vadd.f32 %v1542_v26, %v861_v56  ;;  %v834_v31 = vadd.f32 %v1525_v48, %v805_v62 }
 0x10c   : > { %v877_v6 = vadd.f32 %v1542_v26, %v862_v36  ;;  %897 = vrot.lane.b32.xlu0 %v876_v3, %s1145_s16  ;;  %v863_v19 = vadd.f32 %v855_v2, %v834_v31 }
 0x10e   : > { %899 = vrot.lane.b32.xlu1 %v877_v6, %s1145_s16  ;;  %v878_v55 = vadd.f32 %v1542_v26, %v863_v19 }
 0x110   : > { %901 = vrot.lane.b32.xlu0 %v878_v55, %s1145_s16 }
 0x173   : > { %v888_v35 = vpop.permute.xlu1 %887 }
 0x174   : > { %v911_v52 = vsel %vm518_vm0, %v871_v23, %v888_v35 }
 0x175   : > { %920 = vst.msk [vmem:[%s271_s19] sm:$0xff] %vm919_vm2, %v911_v52  ;;  %v890_v48 = vpop.permute.xlu0 %889 }
 0x176   : > { %v912_v7 = vsel %vm518_vm0, %v872_v34, %v890_v48 }
 0x177   : > { %921 = vst.msk [vmem:[%s271_s19 + $0x8] sm:$0xff] %vm919_vm2, %v912_v7  ;;  %v892_v8 = vpop.permute.xlu1 %891 }
 0x178   : > { %v913_v26 = vsel %vm518_vm0, %v873_v51, %v892_v8 }
 0x179   : > { %922 = vst.msk [vmem:[%s271_s19 + $0x10] sm:$0xff] %vm919_vm2, %v913_v26  ;;  %v894_v37 = vpop.permute.xlu0 %893 }
 0x17a   : > { %v914_v9 = vsel %vm518_vm0, %v874_v5, %v894_v37 }
 0x17b   : > { %923 = vst.msk [vmem:[%s271_s19 + $0x18] sm:$0xff] %vm919_vm2, %v914_v9  ;;  %v896_v10 = vpop.permute.xlu1 %895 }
 0x17c   : > { %v915_v1 = vsel %vm518_vm0, %v875_v18, %v896_v10 }
 0x17d   : > { %924 = vst.msk [vmem:[%s271_s19 + $0x20] sm:$0xff] %vm919_vm2, %v915_v1 }
 0x17e   : > { %v898_v11 = vpop.permute.xlu0 %897 }
 0x17f   : > { %v916_v14 = vsel %vm518_vm0, %v876_v3, %v898_v11 }
 0x180   : > { %v900_v15 = vpop.permute.xlu1 %899  ;;  %925 = vst.msk [vmem:[%s271_s19 + $0x28] sm:$0xff] %vm919_vm2, %v916_v14 }
 0x181   : > { %v917_v17 = vsel %vm518_vm0, %v877_v6, %v900_v15 }
 0x182   : > { %926 = vst.msk [vmem:[%s271_s19 + $0x30] sm:$0xff] %vm919_vm2, %v917_v17  ;;  %v902_v20 = vpop.permute.xlu0 %901 }
 0x183   : > { %v918_v42 = vsel %vm518_vm0, %v878_v55, %v902_v20 }
 0x184   : > { %927 = vst.msk [vmem:[%s271_s19 + $0x38] sm:$0xff] %vm919_vm2, %v918_v42 }
 0x185   : > { %1089 = shalt.err (!%p1086_p3)
}
 0x186   : > { %s1090_s15 = scalar_lea.hbm %s1603_s29, 1024  ;;  %s1094_s19 = scalar_lea.hbm %s1660_s7, 2048 }
 0x187   : > { %p1091_p4 = scmp.ne.s32.totalorder %s1603_s29, %s1090_s15  ;;  %p1095_p9 = scmp.lt.u32.totalorder %s1603_s29, %s1660_s7 }
 0x188   : > { %p1096_p10 = scmp.lt.u32.totalorder %s1094_s19, %s1090_s15  ;;  %p1098_p12 = scmp.lt.u32.totalorder %s1090_s15, %s1603_s29 }
 0x189   : > { %p1092_p7 = pnand %p1091_p4, %p1226_p5 }
 0x18a   : > { %p1097_p11 = por %p1096_p10, %p1095_p9 }
 0x18b   : > { %p1093_p8 = pneg %p1092_p7 }
 0x18c   : > { %p1099_p13 = por %p1098_p12, %p1097_p11 }
 0x18e   : > { %p1100_p0 = pnand %p1099_p13, %p1093_p8 }
 0x190   : > { %1103 = shalt.err (!%p1100_p0)
}
 0x191   : > { %s1147_s23 = smov 128  }
 0x192   : > { %1021 = dma.vmem_to_hbm [thread:$0]  (%p1226_p5), %s1605_s21, 1024, %s1603_s29, %s1611_s28, %s1147_s23, %s1147_s23, %s1145_s16  }
 0x193 PF: > { %p1027_p1 = scmp.ge.s32.totalorder %s1138_s27, 2  ;;  %s957_s8 = sand.u32 1, %s1126_s24  }
 0x194   : > { %s958_s9 = scalar_lea.sflag [#allocation5], %s957_s8 }
 0x195   : > { %p1024_p2 = pnand %p1027_p1, %p1230_p6 }
 0x197   : > { %1121 = dma.done.wait (!%p1024_p2), %s958_s9, 1024  }
 0x198   : > { %1123 = vsyncadd (!%p1024_p2), %s958_s9, 4294966272  ;;  %p17_p3 = scmp.ge.s32.totalorder %s1213_s30, 4   ;;  %s1663_s24 = smov %s1130_s25 }
 0x199   : > { %s1664_s25 = smov %s1134_s26  ;;  %s1665_s26 = smov %s1224_s10 }
 0x19a   : > { %s1666_s27 = smov %s1213_s30  ;;  %19 = sbr.rel (!%p17_p3) target bundleno = 3 (0x3), region = 87 }
 0x1a1   :  { %963 = vsyncpa [#allocation5], 1 }
 0x1a2   :  { %965 = vsyncpa [#allocation5 + $0x1], 1 }

</bundles_post_ra>
